<compile_context>
chip_gen: v7x
topology: tpu7x:2x2x1
jax: 0.10.0
libtpu: 0.0.40
codegen_flags: <defaults>
</compile_context>

<pallas_src>
import functools

import jax
import jax.numpy as jnp
from jax.experimental import pallas as pl
from jax.experimental.pallas import tpu as pltpu


def _weightnet_kernel(x_ref, w1_ref, b1_ref, w2_ref, b2_ref, w3_ref, b3_ref,
                      o_ref, *, compute_dtype):
    # x_ref:  [C_in, tm]   (channels on sublanes, pixels on lanes)
    # wK_ref: [C_k, C_{k-1}] (compute_dtype)   bK_ref: [C_k, 1] (f32)
    # o_ref:  [C_out, tm]
    x = x_ref[...].astype(compute_dtype)

    h = jnp.dot(w1_ref[...], x, preferred_element_type=jnp.float32)
    h = jnp.maximum(h + b1_ref[...], 0.0).astype(compute_dtype)

    h = jnp.dot(w2_ref[...], h, preferred_element_type=jnp.float32)
    h = jnp.maximum(h + b2_ref[...], 0.0).astype(compute_dtype)

    h = jnp.dot(w3_ref[...], h, preferred_element_type=jnp.float32)
    h = jnp.maximum(h + b3_ref[...], 0.0)

    o_ref[...] = h.astype(o_ref.dtype)


def _fold_bn(w, b, gamma, beta, mean, var, eps=1e-5):
    """Fold BatchNorm2d (inference) into the 1x1-conv weight/bias.

    w: [C_out, C_in] (1x1 conv kernel squeezed), b: [C_out].
    Returns W_eff as [C_out, C_in] (kernel computes W @ x) and b_eff as
    [C_out, 1] so the bias broadcasts across lanes (pixels).
    """
    scale = gamma / jnp.sqrt(var + eps)      # [C_out]
    w_eff = w * scale[:, None]               # [C_out, C_in]
    b_eff = (b - mean) * scale + beta        # [C_out]
    return w_eff, b_eff[:, None]             # [C_out, C_in], [C_out, 1]


def weightnet_forward(x_nchw, params, *, tm=32768,
                      compute_dtype=jnp.bfloat16, out_dtype=jnp.bfloat16):
    """x_nchw: [B, C_in, H, W] float32. params: list of per-layer dicts.

    tm: requested pixels-per-tile (128-aligned internally; sweep 32768-65536).
    compute_dtype: dtype of the matmul operands (accumulation stays f32).
    out_dtype: dtype of the returned activation tensor.
    """
    B, C_in, H, W = x_nchw.shape

    # Fold BN into conv for each layer; cast weights (tiny, resident) to the
    # MXU operand dtype once here.  Biases stay f32 (added to the f32 acc).
    folded = [
        _fold_bn(p["w"], p["b"], p["gamma"], p["beta"], p["mean"], p["var"])
        for p in params
    ]
    (w1, b1), (w2, b2), (w3, b3) = folded
    w1 = w1.astype(compute_dtype)
    w2 = w2.astype(compute_dtype)
    w3 = w3.astype(compute_dtype)
    C_out = w3.shape[0]

    # NCHW -> [B, C, H*W] (free reshape, no transpose).
    HW = H * W
    x3d = x_nchw.reshape(B, C_in, HW)

    # --- Balanced, lane-dense tiling --------------------------------------
    hw_128 = pl.cdiv(HW, 128) * 128                  # lane-aligned extent
    tm_req = max(128, (int(tm) // 128) * 128)        # requested tile, aligned
    n_tiles = pl.cdiv(hw_128, tm_req)                # tiles at requested size
    # Megacore (v7x has 2 TCs): keep >=2 total grid steps when possible.
    if B * n_tiles < 2 and hw_128 >= 256:
        n_tiles = 2
    # Re-balance so padding waste is <= n_tiles*128 pixels.
    tm_eff = pl.cdiv(hw_128 // 128, n_tiles) * 128
    HW_pad = n_tiles * tm_eff

    if HW_pad != HW:
        x3d = jnp.pad(x3d, ((0, 0), (0, 0), (0, HW_pad - HW)))

    grid = (B, n_tiles)

    def const_spec(shape):
        # Weights/biases stay resident in VMEM across the whole grid.
        return pl.BlockSpec(shape, lambda b, t, _n=len(shape): (0,) * _n)

    kernel = functools.partial(_weightnet_kernel, compute_dtype=compute_dtype)

    out3d = pl.pallas_call(
        kernel,
        out_shape=jax.ShapeDtypeStruct((B, C_out, HW_pad), out_dtype),
        grid_spec=pltpu.PrefetchScalarGridSpec(
            num_scalar_prefetch=0,
            grid=grid,
            in_specs=[
                pl.BlockSpec((None, C_in, tm_eff), lambda b, t: (b, 0, t)),
                const_spec(w1.shape), const_spec(b1.shape),
                const_spec(w2.shape), const_spec(b2.shape),
                const_spec(w3.shape), const_spec(b3.shape),
            ],
            out_specs=pl.BlockSpec((None, C_out, tm_eff),
                                   lambda b, t: (b, 0, t)),
        ),
        compiler_params=pltpu.CompilerParams(
            dimension_semantics=("parallel", "parallel"),
            vmem_limit_bytes=64 * 1024 * 1024),
    )(x3d, w1, b1, w2, b2, w3, b3)

    # [B, C_out, HW_pad] -> drop padding (only if any) -> NCHW (free reshape).
    if HW_pad != HW:
        out3d = out3d[:, :, :HW]
    return out3d.reshape(B, C_out, H, W)


def init_params(key, in_channel, out_channel, hidden_unit=(8, 8)):
    """Deterministic synthetic parameters matching the module's __init__ shapes."""
    dims = [in_channel] + list(hidden_unit) + [out_channel]
    params = []
    for li in range(len(dims) - 1):
        cin, cout = dims[li], dims[li + 1]
        key, k_w, k_b, k_g, k_be, k_m, k_v = jax.random.split(key, 7)
        params.append(dict(
            w=jax.random.normal(k_w, (cout, cin), jnp.float32) * 0.5,
            b=jax.random.normal(k_b, (cout,), jnp.float32) * 0.1,
            gamma=1.0 + 0.1 * jax.random.normal(k_g, (cout,), jnp.float32),
            beta=0.1 * jax.random.normal(k_be, (cout,), jnp.float32),
            mean=0.1 * jax.random.normal(k_m, (cout,), jnp.float32),
            var=jnp.abs(jax.random.normal(k_v, (cout,), jnp.float32)) + 0.5,
        ))
    return params


def reference_forward(x_nchw, params, eps=1e-5):
    """Pure-JAX reference matching PyTorch eval-mode forward (for validation)."""
    x = x_nchw
    for p in params:
        y = jnp.einsum("oc,bchw->bohw", p["w"], x) + p["b"][None, :, None, None]
        scale = p["gamma"] / jnp.sqrt(p["var"] + eps)
        y = (y - p["mean"][None, :, None, None]) * scale[None, :, None, None] \
            + p["beta"][None, :, None, None]
        x = jnp.maximum(y, 0.0)
    return x


if __name__ == "__main__":
    key = jax.random.PRNGKey(0)
    k_x, k_p, k_x2, k_x3 = jax.random.split(key, 4)

    # WeightNet is typically fed localized_xyz: [B, 3, nsample, npoint].
    B, C_in, H, W = 2, 3, 8, 16
    C_out = 16

    x = jax.random.normal(k_x, (B, C_in, H, W), jnp.float32)
    params = init_params(k_p, C_in, C_out, hidden_unit=(8, 8))
    ref = reference_forward(x, params)

    # 1) Exact-f32 path (tight tolerance): validates the math / BN fold.
    out_f32 = jax.block_until_ready(
        weightnet_forward(x, params,
                          compute_dtype=jnp.float32, out_dtype=jnp.float32))
    assert out_f32.shape == (B, C_out, H, W)
    assert jnp.allclose(out_f32, ref, atol=1e-4, rtol=1e-4), "mismatch (f32)"

    # 2) Default perf path (bf16 operands + bf16 output): loose tolerance.
    out_bf16 = jax.block_until_ready(weightnet_forward(x, params))
    assert out_bf16.dtype == jnp.bfloat16
    assert jnp.allclose(out_bf16.astype(jnp.float32), ref,
                        atol=5e-2, rtol=5e-2), "mismatch (bf16)"

    # 3) Non-divisible spatial size: exercises padded-tail / multi-tile path.
    x2 = jax.random.normal(k_x2, (B, C_in, 10, 13), jnp.float32)
    out2 = jax.block_until_ready(
        weightnet_forward(x2, params, tm=128,
                          compute_dtype=jnp.float32, out_dtype=jnp.float32))
    ref2 = reference_forward(x2, params)
    assert out2.shape == (B, C_out, 10, 13)
    assert jnp.allclose(out2, ref2, atol=1e-4, rtol=1e-4), "mismatch (padded)"

    # 4) B == 1: exercises the megacore >=2-grid-step tile split.
    x3 = jax.random.normal(k_x3, (1, C_in, 16, 16), jnp.float32)
    out3 = jax.block_until_ready(weightnet_forward(x3, params))
    ref3 = reference_forward(x3, params)
    assert out3.shape == (1, C_out, 16, 16)
    assert jnp.allclose(out3.astype(jnp.float32), ref3,
                        atol=5e-2, rtol=5e-2), "mismatch (B=1)"

    print("KERNEL_OK")
</pallas_src>

<mosaic_0001>
module attributes {stable_mosaic.version = 11 : i64} {
  func.func @_weightnet_kernel(%arg0: i32, %arg1: i32, %arg2: memref<1x3x128xf32, #tpu.memory_space<vmem>>, %arg3: memref<8x3xf32, #tpu.memory_space<vmem>>, %arg4: memref<8x1xf32, #tpu.memory_space<vmem>>, %arg5: memref<8x8xf32, #tpu.memory_space<vmem>>, %arg6: memref<8x1xf32, #tpu.memory_space<vmem>>, %arg7: memref<16x8xf32, #tpu.memory_space<vmem>>, %arg8: memref<16x1xf32, #tpu.memory_space<vmem>>, %arg9: memref<1x16x128xf32, #tpu.memory_space<vmem>>) attributes {dimension_semantics = [#tpu.dimension_semantics<parallel>, #tpu.dimension_semantics<parallel>], iteration_bounds = array<i64: 2, 1>, scalar_prefetch = 0 : i64, scratch_operands = 0 : i64, tpu.core_type = #tpu.core_type<tc>, window_params = [{transform_indices = @transform_0, window_bounds = array<i64: 1, 3, 128>}, {pipeline_mode = #tpu.pipeline_mode<synchronous>, transform_indices = @transform_1, window_bounds = array<i64: 8, 3>}, {pipeline_mode = #tpu.pipeline_mode<synchronous>, transform_indices = @transform_2, window_bounds = array<i64: 8, 1>}, {pipeline_mode = #tpu.pipeline_mode<synchronous>, transform_indices = @transform_3, window_bounds = array<i64: 8, 8>}, {pipeline_mode = #tpu.pipeline_mode<synchronous>, transform_indices = @transform_4, window_bounds = array<i64: 8, 1>}, {pipeline_mode = #tpu.pipeline_mode<synchronous>, transform_indices = @transform_5, window_bounds = array<i64: 16, 8>}, {pipeline_mode = #tpu.pipeline_mode<synchronous>, transform_indices = @transform_6, window_bounds = array<i64: 16, 1>}, {transform_indices = @transform_7, window_bounds = array<i64: 1, 16, 128>}]} {
    %c0 = arith.constant 0 : index
    %c0_0 = arith.constant 0 : index
    %c0_1 = arith.constant 0 : index
    %0 = vector.load %arg2[%c0, %c0_0, %c0_1] : memref<1x3x128xf32, #tpu.memory_space<vmem>>, vector<1x3x128xf32>
    %1 = vector.shape_cast %0 : vector<1x3x128xf32> to vector<3x128xf32>
    %c0_2 = arith.constant 0 : index
    %c0_3 = arith.constant 0 : index
    %2 = vector.load %arg3[%c0_2, %c0_3] : memref<8x3xf32, #tpu.memory_space<vmem>>, vector<8x3xf32>
    %cst = arith.constant dense<0.000000e+00> : vector<8x128xf32>
    %3 = tpu.matmul %2, %1, %cst {dimension_numbers = #tpu.dot_dimension_numbers<[1], [0], [0], [1], [0, 0, 1, 1], [], []>} : vector<8x3xf32>, vector<3x128xf32>, vector<8x128xf32> -> vector<8x128xf32>
    %c0_4 = arith.constant 0 : index
    %c0_5 = arith.constant 0 : index
    %4 = vector.load %arg4[%c0_4, %c0_5] : memref<8x1xf32, #tpu.memory_space<vmem>>, vector<8x1xf32>
    %5 = vector.broadcast %4 : vector<8x1xf32> to vector<8x128xf32>
    %6 = arith.addf %3, %5 : vector<8x128xf32>
    %cst_6 = arith.constant 0.000000e+00 : f32
    %7 = vector.broadcast %cst_6 : f32 to vector<8x128xf32>
    %8 = arith.maximumf %6, %7 : vector<8x128xf32>
    %c0_7 = arith.constant 0 : index
    %c0_8 = arith.constant 0 : index
    %9 = vector.load %arg5[%c0_7, %c0_8] : memref<8x8xf32, #tpu.memory_space<vmem>>, vector<8x8xf32>
    %cst_9 = arith.constant dense<0.000000e+00> : vector<8x128xf32>
    %10 = tpu.matmul %9, %8, %cst_9 {dimension_numbers = #tpu.dot_dimension_numbers<[1], [0], [0], [1], [0, 0, 1, 1], [], []>} : vector<8x8xf32>, vector<8x128xf32>, vector<8x128xf32> -> vector<8x128xf32>
    %c0_10 = arith.constant 0 : index
    %c0_11 = arith.constant 0 : index
    %11 = vector.load %arg6[%c0_10, %c0_11] : memref<8x1xf32, #tpu.memory_space<vmem>>, vector<8x1xf32>
    %12 = vector.broadcast %11 : vector<8x1xf32> to vector<8x128xf32>
    %13 = arith.addf %10, %12 : vector<8x128xf32>
    %cst_12 = arith.constant 0.000000e+00 : f32
    %14 = vector.broadcast %cst_12 : f32 to vector<8x128xf32>
    %15 = arith.maximumf %13, %14 : vector<8x128xf32>
    %c0_13 = arith.constant 0 : index
    %c0_14 = arith.constant 0 : index
    %16 = vector.load %arg7[%c0_13, %c0_14] : memref<16x8xf32, #tpu.memory_space<vmem>>, vector<16x8xf32>
    %cst_15 = arith.constant dense<0.000000e+00> : vector<16x128xf32>
    %17 = tpu.matmul %16, %15, %cst_15 {dimension_numbers = #tpu.dot_dimension_numbers<[1], [0], [0], [1], [0, 0, 1, 1], [], []>} : vector<16x8xf32>, vector<8x128xf32>, vector<16x128xf32> -> vector<16x128xf32>
    %c0_16 = arith.constant 0 : index
    %c0_17 = arith.constant 0 : index
    %18 = vector.load %arg8[%c0_16, %c0_17] : memref<16x1xf32, #tpu.memory_space<vmem>>, vector<16x1xf32>
    %19 = vector.broadcast %18 : vector<16x1xf32> to vector<16x128xf32>
    %20 = arith.addf %17, %19 : vector<16x128xf32>
    %cst_18 = arith.constant 0.000000e+00 : f32
    %21 = vector.broadcast %cst_18 : f32 to vector<16x128xf32>
    %22 = arith.maximumf %20, %21 : vector<16x128xf32>
    %c0_19 = arith.constant 0 : index
    %c0_20 = arith.constant 0 : index
    %c0_21 = arith.constant 0 : index
    %23 = vector.load %arg9[%c0_19, %c0_20, %c0_21] : memref<1x16x128xf32, #tpu.memory_space<vmem>>, vector<1x16x128xf32>
    %24 = vector.shape_cast %23 : vector<1x16x128xf32> to vector<16x128xf32>
    %25 = vector.shape_cast %22 : vector<16x128xf32> to vector<1x16x128xf32>
    tpu.vector_store %arg9[%c0_19, %c0_20, %c0_21], %25 {strides = array<i32>} : memref<1x16x128xf32, #tpu.memory_space<vmem>>, vector<1x16x128xf32>,
    return
  }
  func.func @transform_0(%arg0: i32, %arg1: i32) -> (i32, i32, i32) {
    %c0_i32 = arith.constant 0 : i32
    %c0_i32_0 = arith.constant 0 : i32
    return %arg0, %c0_i32, %arg1 : i32, i32, i32
  }
  func.func @transform_1(%arg0: i32, %arg1: i32) -> (i32, i32) {
    %c0_i32 = arith.constant 0 : i32
    %c0_i32_0 = arith.constant 0 : i32
    %c0_i32_1 = arith.constant 0 : i32
    return %c0_i32, %c0_i32_0 : i32, i32
  }
  func.func @transform_2(%arg0: i32, %arg1: i32) -> (i32, i32) {
    %c0_i32 = arith.constant 0 : i32
    %c0_i32_0 = arith.constant 0 : i32
    %c0_i32_1 = arith.constant 0 : i32
    return %c0_i32, %c0_i32_0 : i32, i32
  }
  func.func @transform_3(%arg0: i32, %arg1: i32) -> (i32, i32) {
    %c0_i32 = arith.constant 0 : i32
    %c0_i32_0 = arith.constant 0 : i32
    %c0_i32_1 = arith.constant 0 : i32
    return %c0_i32, %c0_i32_0 : i32, i32
  }
  func.func @transform_4(%arg0: i32, %arg1: i32) -> (i32, i32) {
    %c0_i32 = arith.constant 0 : i32
    %c0_i32_0 = arith.constant 0 : i32
    %c0_i32_1 = arith.constant 0 : i32
    return %c0_i32, %c0_i32_0 : i32, i32
  }
  func.func @transform_5(%arg0: i32, %arg1: i32) -> (i32, i32) {
    %c0_i32 = arith.constant 0 : i32
    %c0_i32_0 = arith.constant 0 : i32
    %c0_i32_1 = arith.constant 0 : i32
    return %c0_i32, %c0_i32_0 : i32, i32
  }
  func.func @transform_6(%arg0: i32, %arg1: i32) -> (i32, i32) {
    %c0_i32 = arith.constant 0 : i32
    %c0_i32_0 = arith.constant 0 : i32
    %c0_i32_1 = arith.constant 0 : i32
    return %c0_i32, %c0_i32_0 : i32, i32
  }
  func.func @transform_7(%arg0: i32, %arg1: i32) -> (i32, i32, i32) {
    %c0_i32 = arith.constant 0 : i32
    %c0_i32_0 = arith.constant 0 : i32
    return %arg0, %c0_i32, %arg1 : i32, i32, i32
  }
}

</mosaic_0001>

<bundles_post_ra>
// kernel: tpu_custom_call.1
= control target key start
LH: loop header
LB: loop body
LE: loop exit
PB: predicated region body
PF: predicated region fallthrough
CT: control target
= control target key end

     0   :  { %s1693_s0 = inlined_call_operand.hbm [shape: f32[2,3,128], index: 0, kind: input, shape index: {}]   ;;  %s1694_s1 = inlined_call_operand.hbm [shape: f32[8,3], index: 1, kind: input, shape index: {}]   ;;  %s1695_s2 = inlined_call_operand.hbm [shape: f32[8,1], index: 2, kind: input, shape index: {}]   ;;  %s1696_s3 = inlined_call_operand.hbm [shape: f32[8,8], index: 3, kind: input, shape index: {}]   ;;  %s1697_s4 = inlined_call_operand.hbm [shape: f32[8,1], index: 4, kind: input, shape index: {}]   ;;  %s1698_s5 = inlined_call_operand.hbm [shape: f32[16,8], index: 5, kind: input, shape index: {}]   ;;  %s1699_s6 = inlined_call_operand.hbm [shape: f32[16,1], index: 6, kind: input, shape index: {}]   ;;  %s1700_s7 = inlined_call_operand.hbm [shape: f32[2,16,128], index: 7, kind: output, shape index: {}]  }
   0x1   :  { %1707 = sst [smem:[#allocation20_spill]] %s1694_s1 }
   0x2   :  { %1708 = sst [smem:[#allocation21_spill]] %s1696_s3 }
   0x3   :  { %1709 = sst [smem:[#allocation22_spill]] %s1700_s7 }
   0x4   :  { %12 = vsyncpa [#allocation3], 0 }
   0x5   :  { %14 = vsyncpa [#allocation3 + $0x1], 0 }
   0x6   :  { %15 = vsyncpa [#allocation6], 0 }
   0x7   :  { %16 = vsyncpa [#allocation9], 0 }
   0x8   :  { %17 = vsyncpa [#allocation12], 0 }
   0x9   :  { %18 = vsyncpa [#allocation4], 0 }
   0xa   :  { %20 = vsyncpa [#allocation4 + $0x1], 0  ;;  %s1349_s24 = smov 0   ;;  %s1351_s25 = smov 0  }
   0xb   :  { %s1353_s26 = smov 0   ;;  %s1355_s27 = smov 0  }
   0xc   :  { %s1357_s28 = smov 0   ;;  %s1359_s29 = smov 0  }
   0xd LB: > { %s1704_s30 = sadd.s32 4294967295, %s1292_s29   ;;  %p816_p0 = scmp.ge.s32.totalorder %s1292_s29, 1  ;;  %s1292_s29 = sphi %s1359_s29, %s26_s29   ;;  %s1288_s28 = sphi %s1357_s28, %s1733_s28   ;;  %s1284_s27 = sphi %s1355_s27, %s1732_s27   ;;  %s1280_s26 = sphi %s1353_s26, %s1731_s26   ;;  %s1276_s25 = sphi %s1351_s25, %s1730_s25   ;;  %s1272_s24 = sphi %s1349_s24, %s1729_s24  }
   0xe   : > { %p1383_p1 = scmp.eq.s32.totalorder %s1704_s30, 0  ;;  %p225_p2 = scmp.lt.s32.totalorder %s1292_s29, 3 }
   0xf   : > { %s1294_s10 = smov [#allocation5]   ;;  %s1295_s12 = smov [#allocation8]  }
  0x10   : > { %s1710_s8 = scalar_select %p1383_p1, 1, 0 }
  0x11   : > { %p1388_p3 = pnand %p816_p0, %p225_p2  ;;  %s238_s11 = sshll.u32 %s1294_s10, 4  ;;  %s239_s11 = int_to_ptr.vmem [resolvable:$true] %s238_s11 }
  0x12   : > { %s260_s13 = sshll.u32 %s1295_s12, 4  ;;  %s1296_s15 = smov [#allocation11]   ;;  %s1401_s13 = int_to_ptr.vmem [resolvable:$true] %s260_s13 }
  0x13   : > { %s1711_s9 = scalar_select %p1388_p3, 1, 0 }
  0x14   : > { %p896_p5 = pneg %p1388_p3  ;;  %s281_s16 = sshll.u32 %s1296_s15, 4  ;;  %s1403_s16 = int_to_ptr.vmem [resolvable:$true] %s281_s16 }
  0x15   : > { %s1713_s1 = sld [smem:[#allocation20_spill]] }
  0x16   : > { %p1397_p6 = pnand %p896_p5, %p1383_p1 }
  0x18   : > { %p1413_p8 = pneg %p1397_p6 }
  0x1b   : > { %s1000_s19 = scalar_lea.hbm %s1713_s1, 128 }
  0x1c   : > { %p1001_p7 = scmp.ne.s32.totalorder %s1713_s1, %s1000_s19  ;;  %p1007_p11 = scmp.lt.u32.totalorder %s1000_s19, %s1713_s1 }
  0x1e   : > { %p1003_p9 = pnand %p1413_p8, %p1001_p7 }
  0x20   : > { %p1004_p10 = pneg %p1003_p9 }
  0x22   : > { %p1009_p12 = pnand %p1007_p11, %p1004_p10 }
  0x24   : > { %1012 = shalt.err (!%p1009_p12)
}
  0x25   : > { %s1013_s12 = scalar_lea.vmem %s239_s11, 128  ;;  %p1021_p5 = scmp.lt.s32.totalorder %s239_s11, %s239_s11 }
  0x26   : > { %p1014_p13 = scmp.ne.s32.totalorder %s239_s11, %s1013_s12  ;;  %p1022_p4 = scmp.lt.s32.totalorder %s1013_s12, %s1013_s12 }
  0x28   : > { %p1016_p0 = pnand %p1014_p13, %p1413_p8  ;;  %p1023_p3 = por %p1022_p4, %p1021_p5 }
  0x2a   : > { %p1017_p2 = pneg %p1016_p0 }
  0x2c   : > { %p1024_p1 = pnand %p1023_p3, %p1017_p2 }
  0x2e   : > { %1027 = shalt.err (!%p1024_p1)
}
  0x2f   : > { %899 = dma.hbm_to_vmem [thread:$0]  (!%p1397_p6), %s1713_s1, 128, %s239_s11, [#allocation6]  }
  0x30   : > { %s1715_s3 = sld [smem:[#allocation21_spill]] }
  0x36   : > { %s1028_s20 = scalar_lea.hbm %s1715_s3, 128 }
  0x37   : > { %p1029_p7 = scmp.ne.s32.totalorder %s1715_s3, %s1028_s20  ;;  %p1035_p1 = scmp.lt.u32.totalorder %s1028_s20, %s1715_s3 }
  0x39   : > { %p1031_p9 = pnand %p1029_p7, %p1413_p8 }
  0x3b   : > { %p1032_p4 = pneg %p1031_p9 }
  0x3d   : > { %p1037_p3 = pnand %p1035_p1, %p1032_p4 }
  0x3f   : > { %1040 = shalt.err (!%p1037_p3)
}
  0x40   : > { %s1041_s11 = scalar_lea.vmem %s1401_s13, 128  ;;  %p1049_p13 = scmp.lt.s32.totalorder %s1401_s13, %s1401_s13 }
  0x41   : > { %p1042_p10 = scmp.ne.s32.totalorder %s1401_s13, %s1041_s11  ;;  %p1050_p0 = scmp.lt.s32.totalorder %s1041_s11, %s1041_s11 }
  0x43   : > { %p1044_p11 = pnand %p1042_p10, %p1413_p8  ;;  %p1051_p2 = por %p1050_p0, %p1049_p13 }
  0x45   : > { %p1045_p12 = pneg %p1044_p11 }
  0x47   : > { %p1052_p5 = pnand %p1051_p2, %p1045_p12 }
  0x49   : > { %1055 = shalt.err (!%p1052_p5)
}
  0x4a   : > { %905 = dma.hbm_to_vmem [thread:$0]  (!%p1397_p6), %s1715_s3, 128, %s1401_s13, [#allocation9]  }
  0x4b   : > { %s1056_s20 = scalar_lea.hbm %s1698_s5, 256 }
  0x4c   : > { %p1057_p7 = scmp.ne.s32.totalorder %s1698_s5, %s1056_s20  ;;  %p1063_p1 = scmp.lt.u32.totalorder %s1056_s20, %s1698_s5 }
  0x4e   : > { %p1059_p9 = pnand %p1057_p7, %p1413_p8 }
  0x50   : > { %p1060_p4 = pneg %p1059_p9 }
  0x52   : > { %p1065_p3 = pnand %p1063_p1, %p1060_p4 }
  0x54   : > { %1068 = shalt.err (!%p1065_p3)
}
  0x55   : > { %s1069_s13 = scalar_lea.vmem %s1403_s16, 256  ;;  %p1077_p13 = scmp.lt.s32.totalorder %s1403_s16, %s1403_s16 }
  0x56   : > { %p1070_p10 = scmp.ne.s32.totalorder %s1403_s16, %s1069_s13  ;;  %p1078_p0 = scmp.lt.s32.totalorder %s1069_s13, %s1069_s13 }
  0x58   : > { %p1072_p11 = pnand %p1070_p10, %p1413_p8  ;;  %p1079_p2 = por %p1078_p0, %p1077_p13 }
  0x5a   : > { %p1073_p12 = pneg %p1072_p11 }
  0x5c   : > { %p1080_p5 = pnand %p1079_p2, %p1073_p12 }
  0x5e   : > { %1083 = shalt.err (!%p1080_p5)
}
  0x5f   : > { %s1297_s11 = smov 128   ;;  %s1298_s15 = smov 8  }
  0x60   : > { %911 = dma.hbm_to_vmem [thread:$0]  (!%p1397_p6), %s1698_s5, 256, %s1403_s16, [#allocation12], %s1297_s11, %s1297_s11, %s1298_s15  }
  0x61   : > { %s1299_s19 = smov [#allocation7]   ;;  %s1300_s21 = smov [#allocation10]  }
  0x62   : > { %s249_s20 = sshll.u32 %s1299_s19, 4  ;;  %s271_s23 = sshll.u32 %s1300_s21, 4  ;;  %s250_s20 = int_to_ptr.vmem [resolvable:$true] %s249_s20  ;;  %s272_s23 = int_to_ptr.vmem [resolvable:$true] %s271_s23 }
  0x63   : > { %s1084_s13 = scalar_lea.hbm %s1695_s2, 128 }
  0x64   : > { %p1085_p7 = scmp.ne.s32.totalorder %s1695_s2, %s1084_s13  ;;  %p1091_p1 = scmp.lt.u32.totalorder %s1084_s13, %s1695_s2 }
  0x66   : > { %p1087_p9 = pnand %p1085_p7, %p1413_p8 }
  0x68   : > { %p1088_p4 = pneg %p1087_p9 }
  0x6a   : > { %p1093_p3 = pnand %p1091_p1, %p1088_p4 }
  0x6c   : > { %1096 = shalt.err (!%p1093_p3)
}
  0x6d   : > { %s1097_s16 = scalar_lea.vmem %s250_s20, 128  ;;  %p1105_p13 = scmp.lt.s32.totalorder %s250_s20, %s250_s20 }
  0x6e   : > { %p1098_p10 = scmp.ne.s32.totalorder %s250_s20, %s1097_s16  ;;  %p1106_p0 = scmp.lt.s32.totalorder %s1097_s16, %s1097_s16 }
  0x70   : > { %p1100_p11 = pnand %p1098_p10, %p1413_p8  ;;  %p1107_p2 = por %p1106_p0, %p1105_p13 }
  0x72   : > { %p1101_p12 = pneg %p1100_p11 }
  0x74   : > { %p1108_p5 = pnand %p1107_p2, %p1101_p12 }
  0x76   : > { %1111 = shalt.err (!%p1108_p5)
}
  0x77   : > { %902 = dma.hbm_to_vmem [thread:$0]  (!%p1397_p6), %s1695_s2, 128, %s250_s20, [#allocation6]  }
  0x78   : > { %s1112_s17 = scalar_lea.hbm %s1697_s4, 128 }
  0x79   : > { %p1113_p7 = scmp.ne.s32.totalorder %s1697_s4, %s1112_s17  ;;  %p1119_p1 = scmp.lt.u32.totalorder %s1112_s17, %s1697_s4 }
  0x7b   : > { %p1115_p9 = pnand %p1113_p7, %p1413_p8 }
  0x7d   : > { %p1116_p4 = pneg %p1115_p9 }
  0x7f   : > { %p1121_p3 = pnand %p1119_p1, %p1116_p4 }
  0x81   : > { %1124 = shalt.err (!%p1121_p3)
}
  0x82   : > { %s1125_s12 = scalar_lea.vmem %s272_s23, 128  ;;  %p1133_p13 = scmp.lt.s32.totalorder %s272_s23, %s272_s23 }
  0x83   : > { %p1126_p10 = scmp.ne.s32.totalorder %s272_s23, %s1125_s12  ;;  %p1134_p0 = scmp.lt.s32.totalorder %s1125_s12, %s1125_s12 }
  0x85   : > { %p1128_p11 = pnand %p1126_p10, %p1413_p8  ;;  %p1135_p2 = por %p1134_p0, %p1133_p13 }
  0x87   : > { %p1129_p12 = pneg %p1128_p11 }
  0x89   : > { %p1136_p5 = pnand %p1135_p2, %p1129_p12 }
  0x8b   : > { %1139 = shalt.err (!%p1136_p5)
}
  0x8c   : > { %908 = dma.hbm_to_vmem [thread:$0]  (!%p1397_p6), %s1697_s4, 128, %s272_s23, [#allocation9]  }
  0x8d   : > { %s1301_s16 = smov [#allocation13]   ;;  %s1140_s7 = scalar_lea.hbm %s1699_s6, 256 }
  0x8e   : > { %s294_s1 = sshll.u32 %s1301_s16, 4  ;;  %p1141_p7 = scmp.ne.s32.totalorder %s1699_s6, %s1140_s7  ;;  %s295_s1 = int_to_ptr.vmem [resolvable:$true] %s294_s1 }
  0x8f   : > { %p1147_p1 = scmp.lt.u32.totalorder %s1140_s7, %s1699_s6 }
  0x90   : > { %p1143_p9 = pnand %p1141_p7, %p1413_p8 }
  0x92   : > { %p1144_p4 = pneg %p1143_p9 }
  0x94   : > { %p1149_p3 = pnand %p1147_p1, %p1144_p4 }
  0x96   : > { %1152 = shalt.err (!%p1149_p3)
}
  0x97   : > { %s1153_s23 = scalar_lea.vmem %s295_s1, 256  ;;  %p1161_p13 = scmp.lt.s32.totalorder %s295_s1, %s295_s1 }
  0x98   : > { %p1154_p10 = scmp.ne.s32.totalorder %s295_s1, %s1153_s23  ;;  %p1162_p0 = scmp.lt.s32.totalorder %s1153_s23, %s1153_s23 }
  0x9a   : > { %p1156_p11 = pnand %p1154_p10, %p1413_p8  ;;  %p1163_p2 = por %p1162_p0, %p1161_p13 }
  0x9c   : > { %p1157_p12 = pneg %p1156_p11 }
  0x9e   : > { %p1164_p5 = pnand %p1163_p2, %p1157_p12 }
  0xa0   : > { %1167 = shalt.err (!%p1164_p5)
}
  0xa1   : > { %914 = dma.hbm_to_vmem [thread:$0]  (!%p1397_p6), %s1699_s6, 256, %s295_s1, [#allocation12], %s1297_s11, %s1297_s11, %s1298_s15  }
  0xa2   : > { %s815_s14 = sadd.s32 4294967294, %s1292_s29   ;;  %s38_s22 = sadd.s32 1, %s1288_s28 }
  0xa3   : > { %p40_p8 = scmp.ge.s32.totalorder %s38_s22, 2  ;;  %s47_s20 = sadd.s32 1, %s1280_s26 }
  0xa4   : > { %p54_p7 = scmp.ne.s32.totalorder %s1280_s26, %s1276_s25  ;;  %p55_p9 = scmp.eq.s32.totalorder %s1292_s29, 0 }
  0xa5   : > { %s1735_s22 = smov (%p40_p8, %s38_s22), 0  ;;  %p60_p1 = scmp.ne.s32.totalorder %s1276_s25, %s1272_s24 }
  0xa6   : > { %p1543_p4 = por %p55_p9, %p54_p7  ;;  %s42_s11 = ssub.s32 %s1288_s28, %s1735_s22 }
  0xa7   : > { %s1717_s15 = sadd.s32 4294967295, %s1292_s29   ;;  %p45_p3 = scmp.eq.s32.totalorder %s42_s11, 0 }
  0xa8   : > { %p212_p6 = scmp.eq.s32.totalorder %s1717_s15, 1  ;;  %p1718_p10 = scmp.ne.s32.totalorder %s1710_s8, 0 }
  0xa9   : > { %p218_p13 = scmp.eq.s32.totalorder %s815_s14, 1  ;;  %p929_p2 = scmp.lt.s32.totalorder %s1292_s29, 2 }
  0xaa   : > { %p1555_p11 = por %p1718_p10, %p60_p1  ;;  %p1559_p12 = por %p212_p6, %p54_p7 }
  0xab   : > { %s1564_s30 = scalar_select %p45_p3, %s1280_s26, %s47_s20  }
  0xac   : > { %s1720_s1 = scalar_select %p1559_p12, 1, 0 }
  0xad   : > { %p1566_p0 = por %p218_p13, %p60_p1  ;;  %s308_s7 = sand.u32 1, %s1280_s26  }
  0xae   : > { %s825_s17 = sshll.u32 %s1288_s28, 6  ;;  %s824_s18 = sshll.u32 %s308_s7, 2 }
  0xaf   : > { %s1721_s3 = scalar_select %p1566_p0, 1, 0 }
  0xb0   : > { %s1576_s23 = scalar_lea.hbm %s1693_s0, %s825_s17  ;;  %s312_s10 = scalar_lea.vmem [#allocation2], %s824_s18 }
  0xb1   : > { %s320_s12 = sshll.u32 %s312_s10, 4  ;;  %p1580_p5 = pnand %p929_p2, %p1543_p4  ;;  %s1584_s12 = int_to_ptr.vmem [resolvable:$true] %s320_s12 }
  0xb2   : > { %s309_s20 = scalar_lea.sflag [#allocation3], %s308_s7  ;;  %s1168_s11 = scalar_lea.hbm %s1576_s23, 64 }
  0xb3   : > { %p1169_p8 = scmp.ne.s32.totalorder %s1576_s23, %s1168_s11  ;;  %p1170_p7 = pneg %p1580_p5 }
  0xb4   : > { %s1173_s13 = scalar_lea.hbm %s1693_s0, 128  ;;  %p1174_p4 = scmp.lt.u32.totalorder %s1576_s23, %s1693_s0 }
  0xb5   : > { %p1171_p9 = pnand %p1170_p7, %p1169_p8  ;;  %p1175_p6 = scmp.lt.u32.totalorder %s1173_s13, %s1168_s11 }
  0xb6   : > { %p1177_p10 = scmp.lt.u32.totalorder %s1168_s11, %s1576_s23 }
  0xb7   : > { %p1172_p1 = pneg %p1171_p9  ;;  %p1176_p3 = por %p1175_p6, %p1174_p4 }
  0xb9   : > { %p1178_p13 = por %p1177_p10, %p1176_p3 }
  0xbb   : > { %p1179_p2 = pnand %p1178_p13, %p1172_p1 }
  0xbd   : > { %1182 = shalt.err (!%p1179_p2)
}
  0xbe   : > { %s1183_s7 = scalar_lea.vmem %s1584_s12, 64  ;;  %s1302_s21 = smov [#allocation2]  }
  0xbf   : > { %p1184_p8 = scmp.ne.s32.totalorder %s1584_s12, %s1183_s7  ;;  %s1188_s10 = sshll.u32 %s1302_s21, 4  ;;  %s1189_s10 = int_to_ptr.vmem [resolvable:$false] %s1188_s10 }
  0xc0   : > { %s1190_s15 = scalar_lea.vmem %s1189_s10, 128  ;;  %p1191_p12 = scmp.lt.s32.totalorder %s1584_s12, %s1189_s10 }
  0xc1   : > { %p1186_p9 = pnand %p1184_p8, %p1170_p7  ;;  %p1192_p4 = scmp.lt.s32.totalorder %s1190_s15, %s1183_s7 }
  0xc3   : > { %p1187_p0 = pneg %p1186_p9  ;;  %p1193_p6 = por %p1192_p4, %p1191_p12 }
  0xc5   : > { %p1194_p3 = pnand %p1193_p6, %p1187_p0 }
  0xc7   : > { %1197 = shalt.err (!%p1194_p3)
}
  0xc8   : > { %918 = dma.hbm_to_vmem [thread:$0]  (!%p1580_p5), %s1576_s23, 64, %s1584_s12, %s309_s20  }
  0xc9   : > { %p1723_p1 = scmp.ne.s32.totalorder %s1711_s9, 0 }
  0xca   : > { %s1614_s11 = sand.u32 (!%p1723_p1), 1, %s1276_s25  }
  0xcb   : > { %329 = sbr.rel (%p1723_p1) target bundleno = 890 (0x37a), region = 48  ;;  %s827_s17 = sshll.u32 (!%p1723_p1), %s1614_s11, 2 }
  0xcc   : > { %s332_s13 = scalar_lea.sflag (!%p1723_p1), [#allocation3], %s1614_s11  ;;  %s335_s18 = scalar_lea.vmem (!%p1723_p1), [#allocation2], %s827_s17 }
  0xd2   : > { %1251 = dma.done.wait (%p1555_p11), %s332_s13, 64  }
  0xd3   : > { %1253 = vsyncadd (%p1555_p11), %s332_s13, 4294967232  ;;  %p1724_p12 = scmp.ne.s32.totalorder %s1710_s8, 0 }
  0xd5   : > { %1255 = dma.done.wait (%p1724_p12), [#allocation6], 256  }
  0xd6   : > { %1257 = vsyncadd (%p1724_p12), [#allocation6], 4294967040 }
  0xd7   : > { %1259 = dma.done.wait (%p1724_p12), [#allocation9], 256  }
  0xd8   : > { %1261 = vsyncadd (%p1724_p12), [#allocation9], 4294967040 }
  0xd9   : > { %1263 = dma.done.wait (%p1724_p12), [#allocation12], 512  }
  0xda   : > { %1265 = vsyncadd (%p1724_p12), [#allocation12], 4294966784  ;;  %v1303_v0 = vmov 0.0   ;;  %vm1304_vm0 = vmmov 0   ;;  %v1305_v1 = vmov 0   ;;  %vm402_vm1 = vcmask 1042432  }
  0xdb   : > { %853 = vmatprep.subr.mxu0 %v1303_v0  ;;  %855 = vmatprep.mubr.msk.f32.mxu0 %vm1304_vm0, %v1303_v0  ;;  %vm398_vm2 = vcmask 23552   ;;  %v390_v2 = vld [vmem:[%s335_s18] sm:$0x7]  ;;  %v391_v3 = vld [vmem:[#allocation5] sm:$0xff]  ;;  %v392_v4 = vld [vmem:[#allocation7] sm:$0xff]  ;;  %vm484_vm3 = vcmask 64512  }
  0xdc   : > { %998 = vset.pattern.permute.xlu0 %v1305_v1  ;;  %858 = vmatprep.subr.mxu1 %v1303_v0  ;;  %v478_v5 = vld [vmem:[#allocation10] sm:$0xff]  ;;  %v477_v11 = vld [vmem:[#allocation8] sm:$0xff]  ;;  %v559_v12 = vld [vmem:[#allocation11] sm:$0xff]  ;;  %s834_s8 = sshll.u32 %s1614_s11, 4  ;;  %s845_s23 = sshll.u32 %s1284_s27, 8 }
  0xdd   : > { %860 = vmatprep.mubr.msk.f32.mxu1 %vm1304_vm0, %v1303_v0  ;;  %999 = vset.pattern.permute.xlu1 %v1305_v1  ;;  %v561_v13 = vld [vmem:[#allocation13] sm:$0xff]  ;;  %v562_v14 = vld [vmem:[#allocation13 + $0x8] sm:$0xff]  ;;  %v560_v20 = vld [vmem:[#allocation11 + $0x8] sm:$0xff]  ;;  %s389_s9 = scalar_lea.vmem [#allocation14], %s834_s8  ;;  %s1725_s20 = sld [smem:[#allocation22_spill]] }
  0xde   : > { %854 = vmatpush3.msk.msra.mxu0 %vm402_vm1, %v390_v2  ;;  %395 = vperm.xlu0 %998, %v392_v4   ;;  %s673_s16 = sshll.u32 %s389_s9, 4  ;;  %s659_s7 = scalar_lea.sflag [#allocation4], %s1614_s11  ;;  %s1639_s16 = int_to_ptr.vmem [resolvable:$true] %s673_s16 }
  0xdf   : > { %856 = vmatmul.mubr.msk.f32.vlgmr.msra.gmra.mrb[0].mxu0 %vm398_vm2, %v391_v3  ;;  %565 = vperm.xlu1 %999, %v561_v13   ;;  %s1198_s21 = scalar_lea.vmem %s1639_s16, 256  ;;  %p1726_p0 = scmp.ne.s32.totalorder %s1720_s1, 0 }
  0xe0   : > { %865 = vmatprep.mubr.msk.f32.mxu0 %vm484_vm3, %v559_v12  ;;  %p1199_p11 = scmp.ne.s32.totalorder %s1639_s16, %s1198_s21  ;;  %s1306_s27 = smov [#allocation14]  }
  0xe1   : > { %s1202_s10 = sshll.u32 %s1306_s27, 4  ;;  %s1203_s10 = int_to_ptr.vmem [resolvable:$false] %s1202_s10 }
  0xe2   : > { %481 = vperm.xlu0 %998, %v478_v5   ;;  %p1200_p5 = pnand %p1199_p11, %p1726_p0  ;;  %s1204_s15 = scalar_lea.vmem %s1203_s10, 512 }
  0xe3   : > { %570 = vperm.xlu1 %999, %v562_v14   ;;  %s1644_s19 = scalar_lea.hbm %s1725_s20, %s845_s23  ;;  %p1205_p10 = scmp.lt.s32.totalorder %s1639_s16, %s1203_s10 }
  0xe4   : > { %p1201_p7 = pneg %p1200_p5  ;;  %p1206_p13 = scmp.lt.s32.totalorder %s1204_s15, %s1198_s21 }
  0xe6   : > { %p1207_p2 = por %p1206_p13, %p1205_p10 }
  0xe8   : > { %p1208_p8 = pnand %p1207_p2, %p1201_p7 }
 0x15d   : > { %v396_v6 = vpop.permute.xlu0 %395 }
 0x15e   : > { %v566_v21 = vpop.permute.xlu1 %565 }
 0x161   : > { %v482_v15 = vpop.permute.xlu0 %481 }
 0x162   : > { %v571_v22 = vpop.permute.xlu1 %570 }
 0x1b2   : > { %v472_v7 = vpop.f32.mrb[0].mxu0 }
 0x1b3   : > { %v473_v8 = vadd.f32 %v472_v7, %v396_v6  ;;  %v857_v9 = vpop.f32.mrb[1].mxu0 }
 0x1b5   : > { %v476_v10 = vmax.f32 %v473_v8, 0.0 }
 0x1b7   : > { %859 = vmatpush3.msra.mxu1 %v476_v10 }
 0x1b8   : > { %861 = vmatmul.mubr.msk.f32.vlgmr.msra.gmra.mrb[0].mxu1 %vm484_vm3, %v477_v11 }
 0x28b   : > { %v554_v16 = vpop.f32.mrb[0].mxu1 }
 0x28c   : > { %v555_v17 = vadd.f32 %v554_v16, %v482_v15  ;;  %v862_v18 = vpop.f32.mrb[1].mxu1 }
 0x28e   : > { %v558_v19 = vmax.f32 %v555_v17, 0.0 }
 0x290   : > { %863 = vmatprep.subr.mxu0 %v558_v19 }
 0x291   : > { %864 = vmatpush3.msra.mxu0 %v558_v19 }
 0x292   : > { %866 = vmatmul.mubr.msk.f32.vlgmr.msra.gmra.mrb[2].mxu0 %vm484_vm3, %v560_v20 }
 0x365   : > { %v867_v23 = vpop.f32.mrb[2].mxu0 }
 0x366   : > { %v651_v24 = vadd.f32 %v867_v23, %v571_v22  ;;  %v645_v25 = vpop.f32.mrb[3].mxu0 }
 0x367   : > { %v646_v26 = vadd.f32 %v645_v25, %v566_v21 }
 0x368   : > { %v655_v27 = vmax.f32 %v651_v24, 0.0 }
 0x369   : > { %v654_v28 = vmax.f32 %v646_v26, 0.0 }
 0x36a   : > { %657 = vst [vmem:[%s389_s9 + $0x8] sm:$0xff] %v655_v27 }
 0x36b   : > { %656 = vst [vmem:[%s389_s9] sm:$0xff] %v654_v28 }
 0x36c   : > { %1211 = shalt.err (!%p1208_p8)
}
 0x36d   : > { %s1212_s17 = scalar_lea.hbm %s1644_s19, 256  ;;  %s1216_s8 = scalar_lea.hbm %s1725_s20, 512 }
 0x36e   : > { %p1213_p9 = scmp.ne.s32.totalorder %s1644_s19, %s1212_s17  ;;  %p1217_p3 = scmp.lt.u32.totalorder %s1644_s19, %s1725_s20 }
 0x36f   : > { %p1218_p1 = scmp.lt.u32.totalorder %s1216_s8, %s1212_s17  ;;  %p1220_p11 = scmp.lt.u32.totalorder %s1212_s17, %s1644_s19 }
 0x370   : > { %p1214_p4 = pnand %p1213_p9, %p1726_p0 }
 0x371   : > { %p1219_p12 = por %p1218_p1, %p1217_p3 }
 0x372   : > { %p1215_p6 = pneg %p1214_p4 }
 0x373   : > { %p1221_p5 = por %p1220_p11, %p1219_p12 }
 0x375   : > { %p1222_p7 = pnand %p1221_p5, %p1215_p6 }
 0x377   : > { %1225 = shalt.err (!%p1222_p7)
}
 0x378   : > { %s1307_s12 = smov 128   ;;  %s1308_s14 = smov 8  }
 0x379   : > { %894 = dma.vmem_to_hbm [thread:$0]  (%p1726_p0), %s1639_s16, 256, %s1644_s19, %s659_s7, %s1307_s12, %s1307_s12, %s1308_s14  }
 0x37a PF: > { %s688_s21 = sand.u32 1, %s1272_s24   ;;  %p1727_p10 = scmp.ne.s32.totalorder %s1721_s3, 0 }
 0x37b   : > { %p1728_p13 = scmp.ge.s32.totalorder %s1292_s29, 2  ;;  %s689_s27 = scalar_lea.sflag [#allocation4], %s688_s21 }
 0x37d   : > { %p920_p2 = pnand %p1728_p13, %p1727_p10 }
 0x37f   : > { %1267 = dma.done.wait (!%p920_p2), %s689_s27, 256  }
 0x380   : > { %1269 = vsyncadd (!%p920_p2), %s689_s27, 4294967040  ;;  %s26_s29 = sadd.s32 1, %s1292_s29   ;;  %s1729_s24 = smov %s1276_s25 }
 0x381   : > { %p23_p8 = scmp.ge.s32.totalorder %s26_s29, 4   ;;  %s1730_s25 = smov %s1280_s26 }
 0x382   : > { %s1731_s26 = smov %s1564_s30  ;;  %s1732_s27 = smov %s1288_s28 }
 0x383   : > { %s1733_s28 = smov %s1735_s22  ;;  %25 = sbr.rel (!%p23_p8) target bundleno = 13 (0xd), region = 117 }
 0x38a   :  { %694 = vsyncpa [#allocation3], 1 }
 0x38b   :  { %696 = vsyncpa [#allocation3 + $0x1], 1 }
 0x38c   :  { %697 = vsyncpa [#allocation6], 1 }
 0x38d   :  { %698 = vsyncpa [#allocation9], 1 }
 0x38e   :  { %699 = vsyncpa [#allocation12], 1 }
 0x38f   :  { %700 = vsyncpa [#allocation4], 1 }
 0x390   :  { %702 = vsyncpa [#allocation4 + $0x1], 1 }

</bundles_post_ra>
